<compile_context>
chip_gen: v7x
topology: tpu7x:2x2x1
jax: 0.10.0
libtpu: 0.0.40
codegen_flags: <defaults>
</compile_context>

<pallas_src>
import functools
import math

import jax
import jax.numpy as jnp
from jax.experimental import pallas as pl
from jax.experimental.pallas import tpu as pltpu


SUBLANES = 8        # rows per component plane
LANE = 128          # lane granularity
MAX_TILE_C = 8192   # max lanes per grid step (block = (4, 8, 8192) f32 = 1 MiB/input)


def _sym_kld_kernel(x1_ref, x2_ref, out_ref, *, nan_to_num: float, normalize: bool):
    # x1_ref/x2_ref: (4, 8, TILE_C) f32 component-major; x_ref[c] is a full
    # (8, TILE_C) tile -> all arithmetic uses whole vregs.
    a00 = x1_ref[0]
    a01 = x1_ref[1]
    a10 = x1_ref[2]
    a11 = x1_ref[3]
    b00 = x2_ref[0]
    b01 = x2_ref[1]
    b10 = x2_ref[2]
    b11 = x2_ref[3]

    det1 = a00 * a11 - a01 * a10
    det2 = b00 * b11 - b01 * b10

    # trace(inv(cov2) @ cov1) = (b11*a00 - b01*a10 - b10*a01 + b00*a11) / det2
    # (the numerator is symmetric, so trace(inv(cov1) @ cov2) uses the same num).
    num = b11 * a00 - b01 * a10 - b10 * a01 + b00 * a11
    tr12 = num / det2
    tr21 = num / det1

    # log(det2/det1) and log(det1/det2) are exact negations under nan_to_num
    # semantics (nan -> 0, +/-inf clamped symmetrically), so compute the log once.
    log12 = jnp.nan_to_num(jnp.log(det2 / det1), nan=0.0)
    log21 = -log12

    # shape_only=True -> displacement term is 0
    kl12 = jnp.nan_to_num(0.5 * (tr12 - 2.0 + log12), nan=nan_to_num)
    kl21 = jnp.nan_to_num(0.5 * (tr21 - 2.0 + log21), nan=nan_to_num)

    kl = 0.5 * (kl12 + kl21)
    if normalize:
        kl = 1.0 - jnp.exp(-kl)

    out_ref[...] = kl


def symmetric_kld_loss(A1: jax.Array, A2: jax.Array, *, shape_only: bool = True,
                       nan_to_num: float = 10.0, normalize: bool = False) -> jax.Array:
    """Pallas implementation of SymmetricKLDLoss.forward (defaults of the nn.Module)."""
    if A1.shape[:-2] != A2.shape[:-2]:
        raise ValueError(
            f"Batch size mismatch: A1 has shape {A1.shape[:-2]}, A2 has shape {A2.shape[:-2]}"
        )
    if not shape_only:
        # TODO(synk): displacement term requires ellipse_center (source not provided).
        raise NotImplementedError("Only shape_only=True is implemented.")

    batch_shape = A1.shape[:-2]
    n = math.prod(batch_shape) if batch_shape else 1

    A1f = A1.reshape(n, 3, 3).astype(jnp.float32)
    A2f = A2.reshape(n, 3, 3).astype(jnp.float32)

    # Choose lane tile / padding: C_total is a multiple of TILE_C (itself a
    # multiple of 128); total padded elements = SUBLANES * C_total.
    cols_needed = max(1, -(-n // SUBLANES))                       # ceil(n / 8)
    tile_c = min(MAX_TILE_C, ((cols_needed + LANE - 1) // LANE) * LANE)
    c_total = ((cols_needed + tile_c - 1) // tile_c) * tile_c
    n_pad = SUBLANES * c_total
    grid = (c_total // tile_c,)

    def pack(A):
        cov = A[:, :2, :2]                       # (n, 2, 2)
        flat = cov.reshape(n, 4).T               # (4, n): rows a00,a01,a10,a11
        flat = jnp.pad(flat, ((0, 0), (0, n_pad - n)))
        return flat.reshape(4, SUBLANES, c_total)  # dense, no filler rows

    x1 = pack(A1f)
    x2 = pack(A2f)

    kernel = functools.partial(_sym_kld_kernel, nan_to_num=float(nan_to_num),
                               normalize=bool(normalize))

    out = pl.pallas_call(
        kernel,
        out_shape=jax.ShapeDtypeStruct((SUBLANES, c_total), jnp.float32),
        grid_spec=pltpu.PrefetchScalarGridSpec(
            num_scalar_prefetch=0,
            grid=grid,
            in_specs=[
                pl.BlockSpec((4, SUBLANES, tile_c), lambda i: (0, 0, i)),
                pl.BlockSpec((4, SUBLANES, tile_c), lambda i: (0, 0, i)),
            ],
            out_specs=pl.BlockSpec((SUBLANES, tile_c), lambda i: (0, i)),
        ),
        compiler_params=pltpu.CompilerParams(dimension_semantics=("parallel",)),
    )(x1, x2)

    # Padded lanes hold nan_to_num garbage (0/0); slice them off before returning.
    kl = out.reshape(n_pad)[:n].reshape(batch_shape)
    return kl


def _reference_sym_kld(A1, A2, nan_to_num=10.0, normalize=False):
    """Pure-JAX reference mirroring the torch code (shape_only=True)."""
    cov1 = A1[..., :2, :2].astype(jnp.float32)
    cov2 = A2[..., :2, :2].astype(jnp.float32)

    def one_dir(c1, c2):
        c2_inv = jnp.linalg.inv(c2)
        tr = jnp.trace(c2_inv @ c1, axis1=-2, axis2=-1)
        log_term = jnp.nan_to_num(jnp.log(jnp.linalg.det(c2) / jnp.linalg.det(c1)), nan=0.0)
        return 0.5 * (tr - 2.0 + log_term)

    kl12 = jnp.nan_to_num(one_dir(cov1, cov2), nan=nan_to_num)
    kl21 = jnp.nan_to_num(one_dir(cov2, cov1), nan=nan_to_num)
    kl = 0.5 * (kl12 + kl21)
    if normalize:
        kl = 1.0 - jnp.exp(-kl)
    return kl


def _make_ellipse_matrices(key, n):
    """Deterministic synthetic conic matrices with SPD top-left 2x2 block."""
    k1, k2, k3 = jax.random.split(key, 3)
    m = jax.random.normal(k1, (n, 2, 2), jnp.float32)
    cov = m @ jnp.swapaxes(m, -1, -2) + 0.5 * jnp.eye(2, dtype=jnp.float32)
    v = jax.random.normal(k2, (n, 2, 1), jnp.float32)
    s = jax.random.normal(k3, (n, 1, 1), jnp.float32)
    top = jnp.concatenate([cov, v], axis=-1)                      # (n, 2, 3)
    bot = jnp.concatenate([jnp.swapaxes(v, -1, -2), s], axis=-1)  # (n, 1, 3)
    return jnp.concatenate([top, bot], axis=-2)                   # (n, 3, 3)


if __name__ == "__main__":
    key = jax.random.PRNGKey(0)
    ka, kb = jax.random.split(key)
    N = 8
    A1 = _make_ellipse_matrices(ka, N)   # (8, 3, 3)
    A2 = _make_ellipse_matrices(kb, N)   # (8, 3, 3)

    kl = symmetric_kld_loss(A1, A2, shape_only=True, nan_to_num=10.0, normalize=False)
    kl = jax.block_until_ready(kl)

    # forward-pass negative-KL check (module raises ValueError on negatives)
    if bool(jnp.any(kl < 0)):
        raise ValueError("Negative KL divergence encountered.")

    ref = _reference_sym_kld(A1, A2)
    assert jnp.allclose(kl, ref, rtol=1e-4, atol=1e-4), (kl, ref)

    print("KERNEL_OK")
</pallas_src>

<mosaic_0001>
module attributes {stable_mosaic.version = 11 : i64} {
  func.func @_sym_kld_kernel(%arg0: i32, %arg1: memref<4x8x128xf32, #tpu.memory_space<vmem>>, %arg2: memref<4x8x128xf32, #tpu.memory_space<vmem>>, %arg3: memref<8x128xf32, #tpu.memory_space<vmem>>) attributes {dimension_semantics = [#tpu.dimension_semantics<parallel>], iteration_bounds = array<i64: 1>, scalar_prefetch = 0 : i64, scratch_operands = 0 : i64, tpu.core_type = #tpu.core_type<tc>, window_params = [{transform_indices = @transform_0, window_bounds = array<i64: 4, 8, 128>}, {transform_indices = @transform_1, window_bounds = array<i64: 4, 8, 128>}, {transform_indices = @transform_2, window_bounds = array<i64: 8, 128>}]} {
    %c0 = arith.constant 0 : index
    %c0_0 = arith.constant 0 : index
    %c0_1 = arith.constant 0 : index
    %0 = vector.load %arg1[%c0, %c0_0, %c0_1] : memref<4x8x128xf32, #tpu.memory_space<vmem>>, vector<1x8x128xf32>
    %1 = vector.shape_cast %0 : vector<1x8x128xf32> to vector<8x128xf32>
    %c1 = arith.constant 1 : index
    %c0_2 = arith.constant 0 : index
    %c0_3 = arith.constant 0 : index
    %2 = vector.load %arg1[%c1, %c0_2, %c0_3] : memref<4x8x128xf32, #tpu.memory_space<vmem>>, vector<1x8x128xf32>
    %3 = vector.shape_cast %2 : vector<1x8x128xf32> to vector<8x128xf32>
    %c2 = arith.constant 2 : index
    %c0_4 = arith.constant 0 : index
    %c0_5 = arith.constant 0 : index
    %4 = vector.load %arg1[%c2, %c0_4, %c0_5] : memref<4x8x128xf32, #tpu.memory_space<vmem>>, vector<1x8x128xf32>
    %5 = vector.shape_cast %4 : vector<1x8x128xf32> to vector<8x128xf32>
    %c3 = arith.constant 3 : index
    %c0_6 = arith.constant 0 : index
    %c0_7 = arith.constant 0 : index
    %6 = vector.load %arg1[%c3, %c0_6, %c0_7] : memref<4x8x128xf32, #tpu.memory_space<vmem>>, vector<1x8x128xf32>
    %7 = vector.shape_cast %6 : vector<1x8x128xf32> to vector<8x128xf32>
    %c0_8 = arith.constant 0 : index
    %c0_9 = arith.constant 0 : index
    %c0_10 = arith.constant 0 : index
    %8 = vector.load %arg2[%c0_8, %c0_9, %c0_10] : memref<4x8x128xf32, #tpu.memory_space<vmem>>, vector<1x8x128xf32>
    %9 = vector.shape_cast %8 : vector<1x8x128xf32> to vector<8x128xf32>
    %c1_11 = arith.constant 1 : index
    %c0_12 = arith.constant 0 : index
    %c0_13 = arith.constant 0 : index
    %10 = vector.load %arg2[%c1_11, %c0_12, %c0_13] : memref<4x8x128xf32, #tpu.memory_space<vmem>>, vector<1x8x128xf32>
    %11 = vector.shape_cast %10 : vector<1x8x128xf32> to vector<8x128xf32>
    %c2_14 = arith.constant 2 : index
    %c0_15 = arith.constant 0 : index
    %c0_16 = arith.constant 0 : index
    %12 = vector.load %arg2[%c2_14, %c0_15, %c0_16] : memref<4x8x128xf32, #tpu.memory_space<vmem>>, vector<1x8x128xf32>
    %13 = vector.shape_cast %12 : vector<1x8x128xf32> to vector<8x128xf32>
    %c3_17 = arith.constant 3 : index
    %c0_18 = arith.constant 0 : index
    %c0_19 = arith.constant 0 : index
    %14 = vector.load %arg2[%c3_17, %c0_18, %c0_19] : memref<4x8x128xf32, #tpu.memory_space<vmem>>, vector<1x8x128xf32>
    %15 = vector.shape_cast %14 : vector<1x8x128xf32> to vector<8x128xf32>
    %16 = arith.mulf %1, %7 : vector<8x128xf32>
    %17 = arith.mulf %3, %5 : vector<8x128xf32>
    %18 = arith.subf %16, %17 : vector<8x128xf32>
    %19 = arith.mulf %9, %15 : vector<8x128xf32>
    %20 = arith.mulf %11, %13 : vector<8x128xf32>
    %21 = arith.subf %19, %20 : vector<8x128xf32>
    %22 = arith.mulf %15, %1 : vector<8x128xf32>
    %23 = arith.mulf %11, %5 : vector<8x128xf32>
    %24 = arith.subf %22, %23 : vector<8x128xf32>
    %25 = arith.mulf %13, %3 : vector<8x128xf32>
    %26 = arith.subf %24, %25 : vector<8x128xf32>
    %27 = arith.mulf %9, %7 : vector<8x128xf32>
    %28 = arith.addf %26, %27 : vector<8x128xf32>
    %29 = arith.divf %28, %21 : vector<8x128xf32>
    %30 = arith.divf %28, %18 : vector<8x128xf32>
    %31 = arith.divf %21, %18 : vector<8x128xf32>
    %32 = math.log %31 : vector<8x128xf32>
    %cst = arith.constant 0.000000e+00 : f32
    %33 = arith.cmpf one, %32, %32 : vector<8x128xf32>
    %34 = vector.broadcast %cst : f32 to vector<8x128xf32>
    %35 = arith.select %33, %34, %32 : vector<8x128xi1>, vector<8x128xf32>
    %cst_20 = arith.constant 0x7F800000 : f32
    %36 = vector.broadcast %cst_20 : f32 to vector<8x128xf32>
    %37 = arith.cmpf oeq, %35, %36 : vector<8x128xf32>
    %cst_21 = arith.constant 3.40282347E+38 : f32
    %38 = vector.broadcast %cst_21 : f32 to vector<8x128xf32>
    %39 = arith.select %37, %38, %35 : vector<8x128xi1>, vector<8x128xf32>
    %cst_22 = arith.constant 0xFF800000 : f32
    %40 = vector.broadcast %cst_22 : f32 to vector<8x128xf32>
    %41 = arith.cmpf oeq, %39, %40 : vector<8x128xf32>
    %cst_23 = arith.constant -3.40282347E+38 : f32
    %42 = vector.broadcast %cst_23 : f32 to vector<8x128xf32>
    %43 = arith.select %41, %42, %39 : vector<8x128xi1>, vector<8x128xf32>
    %cst_24 = arith.constant 0.000000e+00 : f32
    %44 = vector.broadcast %cst_24 : f32 to vector<8x128xf32>
    %45 = arith.subf %44, %43 : vector<8x128xf32>
    %cst_25 = arith.constant 2.000000e+00 : f32
    %46 = vector.broadcast %cst_25 : f32 to vector<8x128xf32>
    %47 = arith.subf %29, %46 : vector<8x128xf32>
    %48 = arith.addf %47, %43 : vector<8x128xf32>
    %cst_26 = arith.constant 5.000000e-01 : f32
    %49 = vector.broadcast %cst_26 : f32 to vector<8x128xf32>
    %50 = arith.mulf %49, %48 : vector<8x128xf32>
    %cst_27 = arith.constant 1.000000e+01 : f32
    %51 = arith.cmpf one, %50, %50 : vector<8x128xf32>
    %52 = vector.broadcast %cst_27 : f32 to vector<8x128xf32>
    %53 = arith.select %51, %52, %50 : vector<8x128xi1>, vector<8x128xf32>
    %cst_28 = arith.constant 0x7F800000 : f32
    %54 = vector.broadcast %cst_28 : f32 to vector<8x128xf32>
    %55 = arith.cmpf oeq, %53, %54 : vector<8x128xf32>
    %cst_29 = arith.constant 3.40282347E+38 : f32
    %56 = vector.broadcast %cst_29 : f32 to vector<8x128xf32>
    %57 = arith.select %55, %56, %53 : vector<8x128xi1>, vector<8x128xf32>
    %cst_30 = arith.constant 0xFF800000 : f32
    %58 = vector.broadcast %cst_30 : f32 to vector<8x128xf32>
    %59 = arith.cmpf oeq, %57, %58 : vector<8x128xf32>
    %cst_31 = arith.constant -3.40282347E+38 : f32
    %60 = vector.broadcast %cst_31 : f32 to vector<8x128xf32>
    %61 = arith.select %59, %60, %57 : vector<8x128xi1>, vector<8x128xf32>
    %cst_32 = arith.constant 2.000000e+00 : f32
    %62 = vector.broadcast %cst_32 : f32 to vector<8x128xf32>
    %63 = arith.subf %30, %62 : vector<8x128xf32>
    %64 = arith.addf %63, %45 : vector<8x128xf32>
    %cst_33 = arith.constant 5.000000e-01 : f32
    %65 = vector.broadcast %cst_33 : f32 to vector<8x128xf32>
    %66 = arith.mulf %65, %64 : vector<8x128xf32>
    %cst_34 = arith.constant 1.000000e+01 : f32
    %67 = arith.cmpf one, %66, %66 : vector<8x128xf32>
    %68 = vector.broadcast %cst_34 : f32 to vector<8x128xf32>
    %69 = arith.select %67, %68, %66 : vector<8x128xi1>, vector<8x128xf32>
    %cst_35 = arith.constant 0x7F800000 : f32
    %70 = vector.broadcast %cst_35 : f32 to vector<8x128xf32>
    %71 = arith.cmpf oeq, %69, %70 : vector<8x128xf32>
    %cst_36 = arith.constant 3.40282347E+38 : f32
    %72 = vector.broadcast %cst_36 : f32 to vector<8x128xf32>
    %73 = arith.select %71, %72, %69 : vector<8x128xi1>, vector<8x128xf32>
    %cst_37 = arith.constant 0xFF800000 : f32
    %74 = vector.broadcast %cst_37 : f32 to vector<8x128xf32>
    %75 = arith.cmpf oeq, %73, %74 : vector<8x128xf32>
    %cst_38 = arith.constant -3.40282347E+38 : f32
    %76 = vector.broadcast %cst_38 : f32 to vector<8x128xf32>
    %77 = arith.select %75, %76, %73 : vector<8x128xi1>, vector<8x128xf32>
    %78 = arith.addf %61, %77 : vector<8x128xf32>
    %cst_39 = arith.constant 5.000000e-01 : f32
    %79 = vector.broadcast %cst_39 : f32 to vector<8x128xf32>
    %80 = arith.mulf %79, %78 : vector<8x128xf32>
    %c0_40 = arith.constant 0 : index
    %c0_41 = arith.constant 0 : index
    %81 = vector.load %arg3[%c0_40, %c0_41] : memref<8x128xf32, #tpu.memory_space<vmem>>, vector<8x128xf32>
    tpu.vector_store %arg3[%c0_40, %c0_41], %80 {strides = array<i32>} : memref<8x128xf32, #tpu.memory_space<vmem>>, vector<8x128xf32>,
    return
  }
  func.func @transform_0(%arg0: i32) -> (i32, i32, i32) {
    %c0_i32 = arith.constant 0 : i32
    %c0_i32_0 = arith.constant 0 : i32
    %c0_i32_1 = arith.constant 0 : i32
    return %c0_i32, %c0_i32_0, %arg0 : i32, i32, i32
  }
  func.func @transform_1(%arg0: i32) -> (i32, i32, i32) {
    %c0_i32 = arith.constant 0 : i32
    %c0_i32_0 = arith.constant 0 : i32
    %c0_i32_1 = arith.constant 0 : i32
    return %c0_i32, %c0_i32_0, %arg0 : i32, i32, i32
  }
  func.func @transform_2(%arg0: i32) -> (i32, i32) {
    %c0_i32 = arith.constant 0 : i32
    %c0_i32_0 = arith.constant 0 : i32
    return %c0_i32, %arg0 : i32, i32
  }
}

</mosaic_0001>

<bundles_post_ra>
// kernel: tpu_custom_call.1
= control target key start
LH: loop header
LB: loop body
LE: loop exit
PB: predicated region body
PF: predicated region fallthrough
CT: control target
= control target key end

     0   :  { %7 = vsyncpa [#allocation3], 0  ;;  %s259_s0 = inlined_call_operand.hbm [shape: f32[4,8,128], index: 0, kind: input, shape index: {}]   ;;  %s260_s1 = inlined_call_operand.hbm [shape: f32[4,8,128], index: 1, kind: input, shape index: {}]   ;;  %s261_s2 = inlined_call_operand.hbm [shape: f32[8,128], index: 2, kind: output, shape index: {}]  }
   0x1   :  { %8 = vsyncpa [#allocation6], 0 }
   0x2   :  { %9 = vsyncpa [#allocation4], 0  ;;  %s203_s9 = smov [#allocation2]   ;;  %s131_s13 = scalar_lea.hbm %s259_s0, 512 }
   0x3   :  { %s15_s10 = sshll.u32 %s203_s9, 4  ;;  %p132_p0 = scmp.ne.s32.totalorder %s259_s0, %s131_s13  ;;  %s16_s10 = int_to_ptr.vmem [resolvable:$true] %s15_s10 }
   0x4   :  { %p135_p1 = scmp.lt.u32.totalorder %s131_s13, %s259_s0 }
   0x6   :  { %p137_p2 = pnand %p135_p1, %p132_p0 }
   0x8   :  { %140 = shalt.err (!%p137_p2)
}
   0x9   :  { %s141_s18 = scalar_lea.vmem %s16_s10, 512  ;;  %p146_p4 = scmp.lt.s32.totalorder %s16_s10, %s16_s10 }
   0xa   :  { %p142_p3 = scmp.ne.s32.totalorder %s16_s10, %s141_s18  ;;  %p147_p5 = scmp.lt.s32.totalorder %s141_s18, %s141_s18 }
   0xc   :  { %p148_p6 = por %p147_p5, %p146_p4 }
   0xe   :  { %p149_p7 = pnand %p148_p6, %p142_p3 }
  0x10   :  { %152 = shalt.err (!%p149_p7)
}
  0x11   :  { %s204_s19 = smov 128   ;;  %s205_s20 = smov 8  }
  0x12   :  { %21 = dma.hbm_to_vmem [thread:$0]  %s259_s0, 512, %s16_s10, [#allocation3], %s204_s19, %s204_s19, %s205_s20  }
  0x13   :  { %s206_s23 = smov [#allocation5]   ;;  %s153_s27 = scalar_lea.hbm %s260_s1, 512 }
  0x14   :  { %s27_s24 = sshll.u32 %s206_s23, 4  ;;  %p154_p8 = scmp.ne.s32.totalorder %s260_s1, %s153_s27  ;;  %s28_s24 = int_to_ptr.vmem [resolvable:$true] %s27_s24 }
  0x15   :  { %p157_p9 = scmp.lt.u32.totalorder %s153_s27, %s260_s1 }
  0x17   :  { %p159_p10 = pnand %p157_p9, %p154_p8 }
  0x19   :  { %162 = shalt.err (!%p159_p10)
}
  0x1a   :  { %s163_s4 = scalar_lea.vmem %s28_s24, 512  ;;  %p168_p12 = scmp.lt.s32.totalorder %s28_s24, %s28_s24 }
  0x1b   :  { %p164_p11 = scmp.ne.s32.totalorder %s28_s24, %s163_s4  ;;  %p169_p13 = scmp.lt.s32.totalorder %s163_s4, %s163_s4 }
  0x1d   :  { %p170_p0 = por %p169_p13, %p168_p12 }
  0x1f   :  { %p171_p1 = pnand %p170_p0, %p164_p11 }
  0x21   :  { %174 = shalt.err (!%p171_p1)
}
  0x22   :  { %33 = dma.hbm_to_vmem [thread:$0]  %s260_s1, 512, %s28_s24, [#allocation6], %s204_s19, %s204_s19, %s205_s20  }
  0x23   :  { %197 = dma.done.wait [#allocation3], 512  }
  0x24   :  { %198 = vsyncadd [#allocation3], 4294966784 }
  0x25   :  { %199 = dma.done.wait [#allocation6], 512  }
  0x26   :  { %200 = vsyncadd [#allocation6], 4294966784  ;;  %v40_v0 = vld [vmem:[#allocation2] sm:$0xff]  ;;  %v42_v1 = vld [vmem:[#allocation2 + $0x8] sm:$0xff]  ;;  %s207_s1 = smov [#allocation7]  }
  0x27   :  { %v44_v2 = vld [vmem:[#allocation2 + $0x10] sm:$0xff]  ;;  %v46_v3 = vld [vmem:[#allocation2 + $0x18] sm:$0xff]  ;;  %v47_v7 = vld [vmem:[#allocation5] sm:$0xff]  ;;  %s108_s6 = sshll.u32 %s207_s1, 4  ;;  %s109_s6 = int_to_ptr.vmem [resolvable:$true] %s108_s6 }
  0x28   :  { %v55_v4 = vmul.f32 %v44_v2, %v42_v1  ;;  %v54_v5 = vmul.f32 %v46_v3, %v40_v0  ;;  %v49_v8 = vld [vmem:[#allocation5 + $0x8] sm:$0xff]  ;;  %v51_v9 = vld [vmem:[#allocation5 + $0x10] sm:$0xff]  ;;  %v53_v10 = vld [vmem:[#allocation5 + $0x18] sm:$0xff]  ;;  %v65_v21 = vmul.f32 %v47_v7, %v46_v3  ;;  %s175_s7 = scalar_lea.vmem %s109_s6, 128  ;;  %p180_p3 = scmp.lt.s32.totalorder %s109_s6, %s109_s6 }
  0x29   :  { %v57_v11 = vmul.f32 %v53_v10, %v47_v7  ;;  %v58_v12 = vmul.f32 %v51_v9, %v49_v8  ;;  %v60_v14 = vmul.f32 %v53_v10, %v40_v0  ;;  %v61_v15 = vmul.f32 %v49_v8, %v44_v2  ;;  %p176_p2 = scmp.ne.s32.totalorder %s109_s6, %s175_s7  ;;  %p181_p4 = scmp.lt.s32.totalorder %s175_s7, %s175_s7 }
  0x2a   :  { %v56_v6 = vsub.f32 %v54_v5, %v55_v4  ;;  %v63_v19 = vmul.f32 %v51_v9, %v42_v1 }
  0x2b   :  { %v59_v13 = vsub.f32 %v57_v11, %v58_v12  ;;  %v62_v18 = vsub.f32 %v60_v14, %v61_v15  ;;  %p182_p5 = por %p181_p4, %p180_p3 }
  0x2c   :  { %125 = vrcp.f32 %v56_v6 }
  0x2d   :  { %127 = vrcp.f32 %v59_v13  ;;  %v64_v20 = vsub.f32 %v62_v18, %v63_v19  ;;  %p183_p6 = pnand %p182_p5, %p176_p2 }
  0x2f   :  { %v66_v22 = vadd.f32 %v65_v21, %v64_v20 }
  0x36   :  { %v126_v16 = vpop.eup %125 }
  0x37   :  { %v71_v17 = vmul.f32 %v126_v16, %v59_v13  ;;  %v128_v23 = vpop.eup %127  ;;  %v70_v27 = vmul.f32 %v126_v16, %v66_v22 }
  0x38   :  { %v68_v25 = vmul.f32 %v128_v23, %v66_v22 }
  0x39   :  { %129 = vlog2.f32 %v71_v17  ;;  %v119_v31 = vadd.f32 -2.0, %v70_v27 }
  0x3a   :  { %v118_v29 = vadd.f32 -2.0, %v68_v25 }
  0x43   :  { %v130_v24 = vpop.eup %129 }
  0x44   :  { %v73_v26 = vmul.f32 0.6931472, %v130_v24 }
  0x46   :  { %vm74_vm0 = vcmp.ne.f32.partialorder %v73_v26, %v73_v26 }
  0x47   :  { %v75_v28 = vsel %vm74_vm0, 0.0, %v73_v26 }
  0x48   :  { %vm76_vm1 = vcmp.eq.f32.partialorder %v75_v28, inf }
  0x49   :  { %v77_v30 = vsel %vm76_vm1, 3.4028235e+38, %v75_v28 }
  0x4a   :  { %vm78_vm2 = vcmp.eq.f32.partialorder %v77_v30, -inf }
  0x4b   :  { %v79_v32 = vsel %vm78_vm2, -3.4028235e+38, %v77_v30 }
  0x4c   :  { %v80_v33 = vsub.f32 0.0, %v79_v32  ;;  %v82_v34 = vadd.f32 %v118_v29, %v79_v32 }
  0x4e   :  { %v83_v35 = vmul.f32 0.5, %v82_v34  ;;  %v91_v36 = vadd.f32 %v119_v31, %v80_v33 }
  0x50   :  { %vm84_vm3 = vcmp.ne.f32.partialorder %v83_v35, %v83_v35  ;;  %v92_v37 = vmul.f32 0.5, %v91_v36 }
  0x51   :  { %v85_v38 = vsel %vm84_vm3, 10.0, %v83_v35 }
  0x52   :  { %vm86_vm4 = vcmp.eq.f32.partialorder %v85_v38, inf  ;;  %vm93_vm5 = vcmp.ne.f32.partialorder %v92_v37, %v92_v37 }
  0x53   :  { %v87_v39 = vsel %vm86_vm4, 3.4028235e+38, %v85_v38  ;;  %v94_v40 = vsel %vm93_vm5, 10.0, %v92_v37 }
  0x54   :  { %vm88_vm6 = vcmp.eq.f32.partialorder %v87_v39, -inf  ;;  %vm95_vm7 = vcmp.eq.f32.partialorder %v94_v40, inf }
  0x55   :  { %v89_v41 = vsel %vm88_vm6, -3.4028235e+38, %v87_v39  ;;  %v96_v42 = vsel %vm95_vm7, 3.4028235e+38, %v94_v40 }
  0x56   :  { %vm97_vm8 = vcmp.eq.f32.partialorder %v96_v42, -inf }
  0x57   :  { %v98_v43 = vsel %vm97_vm8, -3.4028235e+38, %v96_v42 }
  0x58   :  { %v99_v44 = vadd.f32 %v98_v43, %v89_v41 }
  0x5a   :  { %v100_v45 = vmul.f32 0.5, %v99_v44 }
  0x5c   :  { %101 = vst [vmem:[#allocation7] sm:$0xff] %v100_v45 }
  0x5d   :  { %186 = shalt.err (!%p183_p6)
}
  0x5e   :  { %s187_s10 = scalar_lea.hbm %s261_s2, 128 }
  0x5f   :  { %p188_p7 = scmp.ne.s32.totalorder %s261_s2, %s187_s10  ;;  %p191_p8 = scmp.lt.u32.totalorder %s187_s10, %s261_s2 }
  0x61   :  { %p193_p9 = pnand %p191_p8, %p188_p7 }
  0x63   :  { %196 = shalt.err (!%p193_p9)
}
  0x64   :  { %111 = dma.vmem_to_hbm [thread:$0]  %s109_s6, 128, %s261_s2, [#allocation4]  }
  0x65   :  { %201 = dma.done.wait [#allocation4], 128  }
  0x66   :  { %202 = vsyncadd [#allocation4], 4294967168 }
  0x67   :  { %115 = vsyncpa [#allocation3], 1 }
  0x68   :  { %116 = vsyncpa [#allocation6], 1 }
  0x69   :  { %117 = vsyncpa [#allocation4], 1 }

</bundles_post_ra>
